<compile_context>
chip_gen: v7x
topology: tpu7x:2x2x1
jax: 0.10.0
libtpu: 0.0.40
codegen_flags: <defaults>
</compile_context>

<pallas_src>
import functools

import jax
import jax.numpy as jnp
from jax import lax
from jax.experimental import pallas as pl
from jax.experimental.pallas import tpu as pltpu

BN_EPS = 1e-5
_LANE = 128
_SUBLANE = 8
# Target for the double-buffered feats tile: comfortably inside the scoped
# VMEM defaults (16 MiB v5e, 32 MiB v6e/v7x) with headroom for weights/output.
_FEATS_TILE_BUDGET = 8 * 1024 * 1024


def _round_up(x, m):
    return (x + m - 1) // m * m


def _pad_to(x, shape):
    return jnp.pad(x, [(0, s - d) for d, s in zip(x.shape, shape)])


# --------------------------------------------------------------------------
# Kernel 1: masked max-pool over the sequence axis + Linear(input_dim->hidden)
#   grid = (batch_tiles [parallel], seq_tiles [arbitrary, innermost])
#   acc_ref: (TB, D_pad) f32 running max, persists across the sequence axis.
# --------------------------------------------------------------------------
def _pool_linear_kernel(feats_ref, bias_ref, w1_ref, b1_ref, h_ref, acc_ref):
    t = pl.program_id(1)

    @pl.when(t == 0)
    def _init():
        acc_ref[...] = jnp.full(acc_ref.shape, -jnp.inf, acc_ref.dtype)

    # Additive 0/-inf mask (TB, TT, 1) broadcast along the lane (feature) axis.
    x = feats_ref[...].astype(jnp.float32) + bias_ref[...]
    acc_ref[...] = jnp.maximum(acc_ref[...], jnp.max(x, axis=1))

    @pl.when(t == pl.num_programs(1) - 1)
    def _finalize():
        pooled = acc_ref[...].astype(w1_ref.dtype)
        h_ref[...] = (
            jnp.dot(pooled, w1_ref[...], preferred_element_type=jnp.float32)
            + b1_ref[...]
        ).astype(h_ref.dtype)


# --------------------------------------------------------------------------
# Kernel 2: folded BatchNorm affine + ReLU + Linear(hidden -> num_classes)
# --------------------------------------------------------------------------
def _bn_relu_linear_kernel(h_ref, scale_ref, shift_ref, w2_ref, b2_ref, out_ref):
    y = jnp.maximum(h_ref[...] * scale_ref[...] + shift_ref[...], 0.0)
    out_ref[...] = (
        jnp.dot(y.astype(w2_ref.dtype), w2_ref[...],
                preferred_element_type=jnp.float32)
        + b2_ref[...]
    ).astype(out_ref.dtype)


@functools.partial(jax.jit, static_argnames=("block_b", "block_t"))
def simple_maxpool_classifier(feats, lengths, params, *, block_b=None, block_t=None):
    B, T, D = feats.shape
    H = params["w1"].shape[1]
    C = params["w2"].shape[1]

    D_pad = _round_up(D, _LANE)
    H_pad = _round_up(H, _LANE)
    C_pad = _round_up(C, _LANE)

    # ---- tile sizes, re-derived per call against the VMEM budget -----------
    TB = block_b if block_b is not None else min(128, _round_up(B, _SUBLANE))
    TB = max(_SUBLANE, _round_up(TB, _SUBLANE))
    B_pad = _round_up(B, TB)

    itemsize = jnp.dtype(feats.dtype).itemsize
    if block_t is not None:
        TT = min(max(_SUBLANE, _round_up(block_t, _SUBLANE)), _round_up(T, _SUBLANE))
    elif TB * T * D_pad * itemsize * 2 <= _FEATS_TILE_BUDGET:
        TT = T                                     # whole sequence per step
    else:
        TT = max(32, _FEATS_TILE_BUDGET // (TB * D_pad * itemsize * 2) // 32 * 32)
    T_pad = _round_up(T, TT)

    # ---- pad inputs / params to lane- and MXU-friendly shapes ---------------
    feats_p = _pad_to(feats, (B_pad, T_pad, D_pad))
    # Additive sequence mask: 0 where t < length, -inf otherwise. Padded batch
    # rows are all-zero and "valid" so they stay finite (sliced off at the end).
    valid = (jnp.arange(T_pad, dtype=jnp.int32)[None, :]
             < lengths.astype(jnp.int32)[:, None])                   # (B, T_pad)
    bias = jnp.where(valid, 0.0, -jnp.inf).astype(jnp.float32)
    bias = _pad_to(bias, (B_pad, T_pad))[:, :, None]                 # (B_pad, T_pad, 1)

    w1 = _pad_to(params["w1"], (D_pad, H_pad))
    b1 = _pad_to(params["b1"].astype(jnp.float32)[None, :], (1, H_pad))
    gamma = _pad_to(params["gamma"].astype(jnp.float32)[None, :], (1, H_pad))
    beta = _pad_to(params["beta"].astype(jnp.float32)[None, :], (1, H_pad))
    w2 = _pad_to(params["w2"], (H_pad, C_pad))
    b2 = _pad_to(params["b2"].astype(jnp.float32)[None, :], (1, C_pad))

    # ---- kernel 1: masked max-pool + Linear(input_dim -> hidden) ------------
    h = pl.pallas_call(
        _pool_linear_kernel,
        out_shape=jax.ShapeDtypeStruct((B_pad, H_pad), jnp.float32),
        grid=(B_pad // TB, T_pad // TT),
        in_specs=[
            pl.BlockSpec((TB, TT, D_pad), lambda i, t: (i, t, 0)),
            pl.BlockSpec((TB, TT, 1), lambda i, t: (i, t, 0)),
            pl.BlockSpec((D_pad, H_pad), lambda i, t: (0, 0)),
            pl.BlockSpec((1, H_pad), lambda i, t: (0, 0)),
        ],
        out_specs=pl.BlockSpec((TB, H_pad), lambda i, t: (i, 0)),
        scratch_shapes=[pltpu.VMEM((TB, D_pad), jnp.float32)],
        compiler_params=pltpu.CompilerParams(
            dimension_semantics=("parallel", "arbitrary")),
    )(feats_p, bias, w1, b1)

    # ---- BatchNorm1d training-mode batch stats (tiny (B, H) reduction) ------
    # Full-batch statistics (not per-tile) -> BN semantics preserved under tiling.
    h_valid = h[:B]
    mean = jnp.mean(h_valid, axis=0, keepdims=True)
    var = jnp.mean(jnp.square(h_valid - mean), axis=0, keepdims=True)   # biased
    scale = gamma * lax.rsqrt(var + BN_EPS)
    shift = beta - mean * scale

    # ---- kernel 2: BN affine + ReLU + Linear(hidden -> num_classes) ---------
    out = pl.pallas_call(
        _bn_relu_linear_kernel,
        out_shape=jax.ShapeDtypeStruct((B_pad, C_pad), jnp.float32),
        grid=(B_pad // TB,),
        in_specs=[
            pl.BlockSpec((TB, H_pad), lambda i: (i, 0)),
            pl.BlockSpec((1, H_pad), lambda i: (0, 0)),
            pl.BlockSpec((1, H_pad), lambda i: (0, 0)),
            pl.BlockSpec((H_pad, C_pad), lambda i: (0, 0)),
            pl.BlockSpec((1, C_pad), lambda i: (0, 0)),
        ],
        out_specs=pl.BlockSpec((TB, C_pad), lambda i: (i, 0)),
        compiler_params=pltpu.CompilerParams(
            dimension_semantics=("parallel",)),
    )(h, scale, shift, w2, b2)

    return out[:B, :C]


def init_params(key, input_dim, hidden, num_classes):
    """PyTorch-default-style init (uniform +/- 1/sqrt(fan_in); BN gamma=1, beta=0)."""
    k1, k2, k3, k4 = jax.random.split(key, 4)
    lim1 = 1.0 / jnp.sqrt(jnp.float32(input_dim))
    lim2 = 1.0 / jnp.sqrt(jnp.float32(hidden))
    return dict(
        w1=jax.random.uniform(k1, (input_dim, hidden), jnp.float32, -lim1, lim1),
        b1=jax.random.uniform(k2, (hidden,), jnp.float32, -lim1, lim1),
        gamma=jnp.ones((hidden,), jnp.float32),
        beta=jnp.zeros((hidden,), jnp.float32),
        w2=jax.random.uniform(k3, (hidden, num_classes), jnp.float32, -lim2, lim2),
        b2=jax.random.uniform(k4, (num_classes,), jnp.float32, -lim2, lim2),
    )


def _reference(feats, lengths, params):
    """Pure-JAX forward mirroring the kernel's cast points (exact for f32 params)."""
    f32 = jnp.float32
    T = feats.shape[1]
    mask = jnp.arange(T)[None, :] < lengths[:, None]
    pooled = jnp.max(jnp.where(mask[:, :, None], feats.astype(f32), -jnp.inf), axis=1)
    pooled = pooled.astype(params["w1"].dtype).astype(f32)
    h = jnp.dot(pooled, params["w1"].astype(f32),
                precision=lax.Precision.HIGHEST) + params["b1"].astype(f32)
    mean = jnp.mean(h, axis=0, keepdims=True)
    var = jnp.mean(jnp.square(h - mean), axis=0, keepdims=True)   # biased (training)
    h = ((h - mean) * lax.rsqrt(var + BN_EPS) * params["gamma"].astype(f32)
         + params["beta"].astype(f32))
    h = jnp.maximum(h, 0.0)
    h = h.astype(params["w2"].dtype).astype(f32)
    return jnp.dot(h, params["w2"].astype(f32),
                   precision=lax.Precision.HIGHEST) + params["b2"].astype(f32)


if __name__ == "__main__":
    # SimpleMaxPoolClassifier(input_dim=16, num_classes=5, hiddens=[32])
    B, T, D = 14, 12, 16
    HIDDEN, NUM_CLASSES = 32, 5

    key = jax.random.PRNGKey(0)
    k_feats, k_len, k_params = jax.random.split(key, 3)
    feats = jax.random.normal(k_feats, (B, T, D), jnp.float32)
    # NOTE: lengths >= 1; a zero length yields -inf/NaN exactly as in PyTorch.
    lengths = jax.random.randint(k_len, (B,), 1, T + 1).astype(jnp.int32)
    params = init_params(k_params, D, HIDDEN, NUM_CLASSES)

    ref = _reference(feats, lengths, params)

    # (a) f32, auto tile sizes.
    out = jax.block_until_ready(simple_maxpool_classifier(feats, lengths, params))
    assert out.shape == (B, NUM_CLASSES)
    assert jnp.allclose(out, ref, atol=2e-2, rtol=2e-2), "f32 mismatch vs reference"

    # (b) f32, forced small tiles so both the batch and sequence grids really run
    #     (B=14 -> B_pad=16 -> 2 batch tiles; T=12 -> T_pad=16 -> 2 seq tiles).
    out_tiled = jax.block_until_ready(
        simple_maxpool_classifier(feats, lengths, params, block_b=8, block_t=8))
    assert jnp.allclose(out_tiled, ref, atol=2e-2, rtol=2e-2), "tiled mismatch"

    # (c) bf16 feats/weights (v6e/v7x path: halves HBM/VMEM traffic), f32 accum.
    params_bf16 = dict(params,
                       w1=params["w1"].astype(jnp.bfloat16),
                       w2=params["w2"].astype(jnp.bfloat16))
    ref_bf16 = _reference(feats.astype(jnp.bfloat16), lengths, params_bf16)
    out_bf16 = jax.block_until_ready(
        simple_maxpool_classifier(feats.astype(jnp.bfloat16), lengths, params_bf16))
    assert out_bf16.shape == (B, NUM_CLASSES)
    assert jnp.allclose(out_bf16, ref_bf16, atol=5e-2, rtol=5e-2), "bf16 mismatch"

    print("KERNEL_OK")
</pallas_src>

<mosaic_0001>
module attributes {stable_mosaic.version = 11 : i64} {
  func.func @_pool_linear_kernel(%arg0: i32, %arg1: i32, %arg2: memref<16x12x128xf32, #tpu.memory_space<vmem>>, %arg3: memref<16x12x1xf32, #tpu.memory_space<vmem>>, %arg4: memref<128x128xf32, #tpu.memory_space<vmem>>, %arg5: memref<1x128xf32, #tpu.memory_space<vmem>>, %arg6: memref<16x128xf32, #tpu.memory_space<vmem>>, %arg7: memref<16x128xf32, #tpu.memory_space<vmem>>) attributes {dimension_semantics = [#tpu.dimension_semantics<parallel>, #tpu.dimension_semantics<arbitrary>], iteration_bounds = array<i64: 1, 1>, scalar_prefetch = 0 : i64, scratch_operands = 1 : i64, tpu.core_type = #tpu.core_type<tc>, window_params = [{transform_indices = @transform_0, window_bounds = array<i64: 16, 12, 128>}, {transform_indices = @transform_1, window_bounds = array<i64: 16, 12, 1>}, {pipeline_mode = #tpu.pipeline_mode<synchronous>, transform_indices = @transform_2, window_bounds = array<i64: 128, 128>}, {pipeline_mode = #tpu.pipeline_mode<synchronous>, transform_indices = @transform_3, window_bounds = array<i64: 1, 128>}, {transform_indices = @transform_4, window_bounds = array<i64: 16, 128>}]} {
    %c0_i32 = arith.constant 0 : i32
    %0 = arith.cmpi eq, %arg1, %c0_i32 : i32
    %1 = arith.extui %0 : i1 to i32
    %c0_i32_0 = arith.constant 0 : i32
    %2 = arith.cmpi ne, %1, %c0_i32_0 : i32
    scf.if %2 {
      %cst_12 = arith.constant 0xFF800000 : f32
      %14 = vector.broadcast %cst_12 : f32 to vector<16x128xf32>
      %c0_13 = arith.constant 0 : index
      %c0_14 = arith.constant 0 : index
      %15 = vector.load %arg7[%c0_13, %c0_14] : memref<16x128xf32, #tpu.memory_space<vmem>>, vector<16x128xf32>
      tpu.vector_store %arg7[%c0_13, %c0_14], %14 {strides = array<i32>} : memref<16x128xf32, #tpu.memory_space<vmem>>, vector<16x128xf32>,
    } else {
    }
    %c0 = arith.constant 0 : index
    %c0_1 = arith.constant 0 : index
    %c0_2 = arith.constant 0 : index
    %3 = vector.load %arg2[%c0, %c0_1, %c0_2] : memref<16x12x128xf32, #tpu.memory_space<vmem>>, vector<16x12x128xf32>
    %c0_3 = arith.constant 0 : index
    %c0_4 = arith.constant 0 : index
    %c0_5 = arith.constant 0 : index
    %4 = vector.load %arg3[%c0_3, %c0_4, %c0_5] : memref<16x12x1xf32, #tpu.memory_space<vmem>>, vector<16x12x1xf32>
    %5 = vector.broadcast %4 : vector<16x12x1xf32> to vector<16x12x128xf32>
    %6 = arith.addf %3, %5 : vector<16x12x128xf32>
    %c0_6 = arith.constant 0 : index
    %c0_7 = arith.constant 0 : index
    %7 = vector.load %arg7[%c0_6, %c0_7] : memref<16x128xf32, #tpu.memory_space<vmem>>, vector<16x128xf32>
    %cst = arith.constant dense<0xFF800000> : vector<16x128xf32>
    %8 = vector.multi_reduction <maximumf>, %6, %cst [1] : vector<16x12x128xf32> to vector<16x128xf32>
    %9 = arith.maximumf %7, %8 : vector<16x128xf32>
    %c0_8 = arith.constant 0 : index
    %c0_9 = arith.constant 0 : index
    %10 = vector.load %arg7[%c0_8, %c0_9] : memref<16x128xf32, #tpu.memory_space<vmem>>, vector<16x128xf32>
    tpu.vector_store %arg7[%c0_8, %c0_9], %9 {strides = array<i32>} : memref<16x128xf32, #tpu.memory_space<vmem>>, vector<16x128xf32>,
    %c0_i32_10 = arith.constant 0 : i32
    %11 = arith.cmpi eq, %arg1, %c0_i32_10 : i32
    %12 = arith.extui %11 : i1 to i32
    %c0_i32_11 = arith.constant 0 : i32
    %13 = arith.cmpi ne, %12, %c0_i32_11 : i32
    scf.if %13 {
      %c0_12 = arith.constant 0 : index
      %c0_13 = arith.constant 0 : index
      %14 = vector.load %arg7[%c0_12, %c0_13] : memref<16x128xf32, #tpu.memory_space<vmem>>, vector<16x128xf32>
      %c0_14 = arith.constant 0 : index
      %c0_15 = arith.constant 0 : index
      %15 = vector.load %arg4[%c0_14, %c0_15] : memref<128x128xf32, #tpu.memory_space<vmem>>, vector<128x128xf32>
      %cst_16 = arith.constant dense<0.000000e+00> : vector<16x128xf32>
      %16 = tpu.matmul %14, %15, %cst_16 {dimension_numbers = #tpu.dot_dimension_numbers<[1], [0], [0], [1], [0, 0, 1, 1], [], []>} : vector<16x128xf32>, vector<128x128xf32>, vector<16x128xf32> -> vector<16x128xf32>
      %c0_17 = arith.constant 0 : index
      %c0_18 = arith.constant 0 : index
      %17 = vector.load %arg5[%c0_17, %c0_18] : memref<1x128xf32, #tpu.memory_space<vmem>>, vector<1x128xf32>
      %18 = vector.broadcast %17 : vector<1x128xf32> to vector<16x128xf32>
      %19 = arith.addf %16, %18 : vector<16x128xf32>
      %c0_19 = arith.constant 0 : index
      %c0_20 = arith.constant 0 : index
      %20 = vector.load %arg6[%c0_19, %c0_20] : memref<16x128xf32, #tpu.memory_space<vmem>>, vector<16x128xf32>
      tpu.vector_store %arg6[%c0_19, %c0_20], %19 {strides = array<i32>} : memref<16x128xf32, #tpu.memory_space<vmem>>, vector<16x128xf32>,
    } else {
    }
    return
  }
  func.func @transform_0(%arg0: i32, %arg1: i32) -> (i32, i32, i32) {
    %c0_i32 = arith.constant 0 : i32
    %c0_i32_0 = arith.constant 0 : i32
    return %arg0, %arg1, %c0_i32 : i32, i32, i32
  }
  func.func @transform_1(%arg0: i32, %arg1: i32) -> (i32, i32, i32) {
    %c0_i32 = arith.constant 0 : i32
    %c0_i32_0 = arith.constant 0 : i32
    return %arg0, %arg1, %c0_i32 : i32, i32, i32
  }
  func.func @transform_2(%arg0: i32, %arg1: i32) -> (i32, i32) {
    %c0_i32 = arith.constant 0 : i32
    %c0_i32_0 = arith.constant 0 : i32
    %c0_i32_1 = arith.constant 0 : i32
    return %c0_i32, %c0_i32_0 : i32, i32
  }
  func.func @transform_3(%arg0: i32, %arg1: i32) -> (i32, i32) {
    %c0_i32 = arith.constant 0 : i32
    %c0_i32_0 = arith.constant 0 : i32
    %c0_i32_1 = arith.constant 0 : i32
    return %c0_i32, %c0_i32_0 : i32, i32
  }
  func.func @transform_4(%arg0: i32, %arg1: i32) -> (i32, i32) {
    %c0_i32 = arith.constant 0 : i32
    %c0_i32_0 = arith.constant 0 : i32
    return %arg0, %c0_i32 : i32, i32
  }
}

module attributes {stable_mosaic.version = 11 : i64} {
  func.func @_bn_relu_linear_kernel(%arg0: i32, %arg1: memref<16x128xf32, #tpu.memory_space<vmem>>, %arg2: memref<1x128xf32, #tpu.memory_space<vmem>>, %arg3: memref<1x128xf32, #tpu.memory_space<vmem>>, %arg4: memref<128x128xf32, #tpu.memory_space<vmem>>, %arg5: memref<1x128xf32, #tpu.memory_space<vmem>>, %arg6: memref<16x128xf32, #tpu.memory_space<vmem>>) attributes {dimension_semantics = [#tpu.dimension_semantics<parallel>], iteration_bounds = array<i64: 1>, scalar_prefetch = 0 : i64, scratch_operands = 0 : i64, tpu.core_type = #tpu.core_type<tc>, window_params = [{transform_indices = @transform_0, window_bounds = array<i64: 16, 128>}, {pipeline_mode = #tpu.pipeline_mode<synchronous>, transform_indices = @transform_1, window_bounds = array<i64: 1, 128>}, {pipeline_mode = #tpu.pipeline_mode<synchronous>, transform_indices = @transform_2, window_bounds = array<i64: 1, 128>}, {pipeline_mode = #tpu.pipeline_mode<synchronous>, transform_indices = @transform_3, window_bounds = array<i64: 128, 128>}, {pipeline_mode = #tpu.pipeline_mode<synchronous>, transform_indices = @transform_4, window_bounds = array<i64: 1, 128>}, {transform_indices = @transform_5, window_bounds = array<i64: 16, 128>}]} {
    %c0 = arith.constant 0 : index
    %c0_0 = arith.constant 0 : index
    %0 = vector.load %arg1[%c0, %c0_0] : memref<16x128xf32, #tpu.memory_space<vmem>>, vector<16x128xf32>
    %c0_1 = arith.constant 0 : index
    %c0_2 = arith.constant 0 : index
    %1 = vector.load %arg2[%c0_1, %c0_2] : memref<1x128xf32, #tpu.memory_space<vmem>>, vector<1x128xf32>
    %2 = vector.broadcast %1 : vector<1x128xf32> to vector<16x128xf32>
    %3 = arith.mulf %0, %2 : vector<16x128xf32>
    %c0_3 = arith.constant 0 : index
    %c0_4 = arith.constant 0 : index
    %4 = vector.load %arg3[%c0_3, %c0_4] : memref<1x128xf32, #tpu.memory_space<vmem>>, vector<1x128xf32>
    %5 = vector.broadcast %4 : vector<1x128xf32> to vector<16x128xf32>
    %6 = arith.addf %3, %5 : vector<16x128xf32>
    %cst = arith.constant 0.000000e+00 : f32
    %7 = vector.broadcast %cst : f32 to vector<16x128xf32>
    %8 = arith.maximumf %6, %7 : vector<16x128xf32>
    %c0_5 = arith.constant 0 : index
    %c0_6 = arith.constant 0 : index
    %9 = vector.load %arg4[%c0_5, %c0_6] : memref<128x128xf32, #tpu.memory_space<vmem>>, vector<128x128xf32>
    %cst_7 = arith.constant dense<0.000000e+00> : vector<16x128xf32>
    %10 = tpu.matmul %8, %9, %cst_7 {dimension_numbers = #tpu.dot_dimension_numbers<[1], [0], [0], [1], [0, 0, 1, 1], [], []>} : vector<16x128xf32>, vector<128x128xf32>, vector<16x128xf32> -> vector<16x128xf32>
    %c0_8 = arith.constant 0 : index
    %c0_9 = arith.constant 0 : index
    %11 = vector.load %arg5[%c0_8, %c0_9] : memref<1x128xf32, #tpu.memory_space<vmem>>, vector<1x128xf32>
    %12 = vector.broadcast %11 : vector<1x128xf32> to vector<16x128xf32>
    %13 = arith.addf %10, %12 : vector<16x128xf32>
    %c0_10 = arith.constant 0 : index
    %c0_11 = arith.constant 0 : index
    %14 = vector.load %arg6[%c0_10, %c0_11] : memref<16x128xf32, #tpu.memory_space<vmem>>, vector<16x128xf32>
    tpu.vector_store %arg6[%c0_10, %c0_11], %13 {strides = array<i32>} : memref<16x128xf32, #tpu.memory_space<vmem>>, vector<16x128xf32>,
    return
  }
  func.func @transform_0(%arg0: i32) -> (i32, i32) {
    %c0_i32 = arith.constant 0 : i32
    %c0_i32_0 = arith.constant 0 : i32
    return %arg0, %c0_i32 : i32, i32
  }
  func.func @transform_1(%arg0: i32) -> (i32, i32) {
    %c0_i32 = arith.constant 0 : i32
    %c0_i32_0 = arith.constant 0 : i32
    %c0_i32_1 = arith.constant 0 : i32
    return %c0_i32, %c0_i32_0 : i32, i32
  }
  func.func @transform_2(%arg0: i32) -> (i32, i32) {
    %c0_i32 = arith.constant 0 : i32
    %c0_i32_0 = arith.constant 0 : i32
    %c0_i32_1 = arith.constant 0 : i32
    return %c0_i32, %c0_i32_0 : i32, i32
  }
  func.func @transform_3(%arg0: i32) -> (i32, i32) {
    %c0_i32 = arith.constant 0 : i32
    %c0_i32_0 = arith.constant 0 : i32
    %c0_i32_1 = arith.constant 0 : i32
    return %c0_i32, %c0_i32_0 : i32, i32
  }
  func.func @transform_4(%arg0: i32) -> (i32, i32) {
    %c0_i32 = arith.constant 0 : i32
    %c0_i32_0 = arith.constant 0 : i32
    %c0_i32_1 = arith.constant 0 : i32
    return %c0_i32, %c0_i32_0 : i32, i32
  }
  func.func @transform_5(%arg0: i32) -> (i32, i32) {
    %c0_i32 = arith.constant 0 : i32
    %c0_i32_0 = arith.constant 0 : i32
    return %arg0, %c0_i32 : i32, i32
  }
}

</mosaic_0001>

<bundles_post_ra>
// kernel: simple_maxpool_classifier.3
= control target key start
LH: loop header
LB: loop body
LE: loop exit
PB: predicated region body
PF: predicated region fallthrough
CT: control target
= control target key end

     0   :  { %s333_s3 = inlined_call_operand.vmem [shape: f32[128,128], index: 3, kind: input, shape index: {}]   ;;  %s334_s0 = inlined_call_operand.vmem [shape: f32[16,128], index: 0, kind: input, shape index: {}]   ;;  %s335_s1 = inlined_call_operand.vmem [shape: f32[1,128], index: 1, kind: input, shape index: {}]   ;;  %s336_s2 = inlined_call_operand.vmem [shape: f32[1,128], index: 2, kind: input, shape index: {}]   ;;  %s337_s4 = inlined_call_operand.vmem [shape: f32[1,128], index: 4, kind: input, shape index: {}]   ;;  %s338_s5 = inlined_call_operand.vmem [shape: f32[16,128], index: 5, kind: output, shape index: {}]  }
   0x1   :  { %v42_v0 = vld [vmem:[%s333_s3] sm:$0xff]  ;;  %v43_v1 = vld [vmem:[%s333_s3 + $0x8] sm:$0xff]  ;;  %v44_v2 = vld [vmem:[%s333_s3 + $0x10] sm:$0xff] }
   0x2   :  { %v202_v3 = vpack.c.bf16 %v43_v1, %v42_v0  ;;  %v45_v4 = vld [vmem:[%s333_s3 + $0x18] sm:$0xff]  ;;  %v46_v6 = vld [vmem:[%s333_s3 + $0x20] sm:$0xff]  ;;  %v47_v7 = vld [vmem:[%s333_s3 + $0x28] sm:$0xff] }
   0x3   :  { %v206_v5 = vpack.c.bf16 %v45_v4, %v44_v2  ;;  %v210_v8 = vpack.c.bf16 %v47_v7, %v46_v6  ;;  %v48_v9 = vld [vmem:[%s333_s3 + $0x30] sm:$0xff]  ;;  %v20_v10 = vld [vmem:[%s334_s0] sm:$0xff]  ;;  %v49_v11 = vld [vmem:[%s333_s3 + $0x38] sm:$0xff] }
   0x4   :  { %203 = vmatprep.subr.bf16.mxu0 %v202_v3  ;;  %v146_v12 = vld [vmem:[%s335_s1] ss:$0 sm:$0xff]  ;;  %v214_v15 = vpack.c.bf16 %v49_v11, %v48_v9  ;;  %v51_v18 = vld [vmem:[%s333_s3 + $0x48] sm:$0xff]  ;;  %v52_v21 = vld [vmem:[%s333_s3 + $0x50] sm:$0xff] }
   0x5   :  { %205 = vmatpush3.bf16.msra.mxu0 %v202_v3  ;;  %v147_v13 = vld [vmem:[%s336_s2] ss:$0 sm:$0xff]  ;;  %v29_v14 = vmul.f32 %v146_v12, %v20_v10  ;;  %v53_v22 = vld [vmem:[%s333_s3 + $0x58] sm:$0xff]  ;;  %v55_v25 = vld [vmem:[%s333_s3 + $0x68] sm:$0xff] }
   0x6   :  { %207 = vmatprep.subr.bf16.mxu0 %v206_v5  ;;  %v50_v17 = vld [vmem:[%s333_s3 + $0x40] sm:$0xff]  ;;  %v222_v23 = vpack.c.bf16 %v53_v22, %v52_v21  ;;  %v21_v26 = vld [vmem:[%s334_s0 + $0x8] sm:$0xff]  ;;  %v56_v28 = vld [vmem:[%s333_s3 + $0x70] sm:$0xff] }
   0x7   :  { %v38_v16 = vadd.f32 %v147_v13, %v29_v14  ;;  %v218_v20 = vpack.c.bf16 %v51_v18, %v50_v17  ;;  %v54_v24 = vld [vmem:[%s333_s3 + $0x60] sm:$0xff]  ;;  %v57_v29 = vld [vmem:[%s333_s3 + $0x78] sm:$0xff]  ;;  %v30_v30 = vmul.f32 %v146_v12, %v21_v26 }
   0x8   :  { %v226_v27 = vpack.c.bf16 %v55_v25, %v54_v24  ;;  %v230_v31 = vpack.c.bf16 %v57_v29, %v56_v28  ;;  %v148_v34 = vld [vmem:[%s337_s4] ss:$0 sm:$0xff] }
   0x9   :  { %209 = vmatpush3.bf16.msra.mxu0 %v206_v5  ;;  %v40_v19 = vmax.f32 %v38_v16, 0.0  ;;  %v39_v32 = vadd.f32 %v147_v13, %v30_v30 }
   0xa   :  { %211 = vmatprep.subr.bf16.mxu0 %v210_v8 }
   0xb   :  { %199 = vmatprep.mubr.f32.mxu0 %v40_v19  ;;  %v41_v33 = vmax.f32 %v39_v32, 0.0 }
   0xd   :  { %213 = vmatpush3.bf16.msra.mxu0 %v210_v8 }
   0xe   :  { %215 = vmatprep.subr.bf16.mxu0 %v214_v15 }
  0x11   :  { %217 = vmatpush3.bf16.msra.mxu0 %v214_v15 }
  0x12   :  { %219 = vmatprep.subr.bf16.mxu0 %v218_v20 }
  0x15   :  { %221 = vmatpush3.bf16.msra.mxu0 %v218_v20 }
  0x16   :  { %223 = vmatprep.subr.bf16.mxu0 %v222_v23 }
  0x19   :  { %225 = vmatpush3.bf16.msra.mxu0 %v222_v23 }
  0x1a   :  { %227 = vmatprep.subr.bf16.mxu0 %v226_v27 }
  0x1d   :  { %229 = vmatpush3.bf16.msra.mxu0 %v226_v27 }
  0x1e   :  { %231 = vmatprep.subr.bf16.mxu0 %v230_v31 }
  0x21   :  { %233 = vmatpush3.bf16.msra.mxu0 %v230_v31 }
  0x24   :  { %200 = vmatmul.mubr.f32.vlgmr.msra.gmra.mrb[0].mxu0 %v41_v33 }
  0xf7   :  { %v201_v35 = vpop.f32.mrb[0].mxu0 }
  0xf8   :  { %v137_v36 = vadd.f32 %v201_v35, %v148_v34  ;;  %v131_v37 = vpop.f32.mrb[1].mxu0 }
  0xf9   :  { %v132_v38 = vadd.f32 %v148_v34, %v131_v37 }
  0xfa   :  { %141 = vst [vmem:[%s338_s5 + $0x8] sm:$0xff] %v137_v36 }
  0xfb   :  { %140 = vst [vmem:[%s338_s5] sm:$0xff] %v132_v38 }

// kernel: simple_maxpool_classifier.2
= control target key start
LH: loop header
LB: loop body
LE: loop exit
PB: predicated region body
PF: predicated region fallthrough
CT: control target
= control target key end

     0   :  { %v651_v0 = vmov 0   ;;  %vm281_vm0 = vcmask 1043456   ;;  %vm426_vm1 = vcmask 1041409   ;;  %vm428_vm2 = vcmask 1042434   ;;  %s968_s1 = inlined_call_operand.vmem [shape: f32[16,12,1], index: 1, kind: input, shape index: {}]   ;;  %s969_s2 = inlined_call_operand.vmem [shape: f32[128,128], index: 2, kind: input, shape index: {}]   ;;  %s970_s0 = inlined_call_operand.vmem [shape: f32[16,12,128], index: 0, kind: input, shape index: {}]   ;;  %s971_s3 = inlined_call_operand.vmem [shape: f32[1,128], index: 3, kind: input, shape index: {}]   ;;  %s972_s4 = inlined_call_operand.vmem [shape: f32[16,128], index: 4, kind: output, shape index: {}]  }
   0x1   :  { %650 = vset.pattern.permute.xlu1 %v651_v0  ;;  %649 = vset.pattern.permute.xlu0 %v651_v0  ;;  %v56_v1 = vld [vmem:[%s968_s1 + $0x8] sm:$0xf]  ;;  %v55_v2 = vld [vmem:[%s968_s1] sm:$0xff]  ;;  %v58_v3 = vld [vmem:[%s968_s1 + $0x18] sm:$0xf]  ;;  %vm430_vm3 = vcmask 1043459  }
   0x2   :  { %94 = vperm.xlu0 %649, %v56_v1   ;;  %89 = vperm.xlu1 %650, %v55_v2   ;;  %v57_v4 = vld [vmem:[%s968_s1 + $0x10] sm:$0xff]  ;;  %v60_v5 = vld [vmem:[%s968_s1 + $0x28] sm:$0xf]  ;;  %v74_v7 = vld [vmem:[%s968_s1 + $0x98] sm:$0xf]  ;;  %vm432_vm4 = vcmask 1044484  }
   0x3   :  { %v72_v6 = vld [vmem:[%s968_s1 + $0x88] sm:$0xf]  ;;  %v59_v8 = vld [vmem:[%s968_s1 + $0x20] sm:$0xff]  ;;  %v62_v9 = vld [vmem:[%s968_s1 + $0x38] sm:$0xf]  ;;  %vm434_vm5 = vcmask 1045509  }
   0x4   :  { %v71_v10 = vld [vmem:[%s968_s1 + $0x80] sm:$0xff]  ;;  %v73_v11 = vld [vmem:[%s968_s1 + $0x90] sm:$0xff]  ;;  %v76_v12 = vld [vmem:[%s968_s1 + $0xa8] sm:$0xf]  ;;  %vm436_vm6 = vcmask 1046534   ;;  %vm438_vm7 = vcmask 1047559  }
   0x5   :  { %v61_v13 = vld [vmem:[%s968_s1 + $0x30] sm:$0xff]  ;;  %v64_v14 = vld [vmem:[%s968_s1 + $0x48] sm:$0xf]  ;;  %v75_v15 = vld [vmem:[%s968_s1 + $0xa0] sm:$0xff] }
   0x6   :  { %104 = vperm.xlu0 %649, %v58_v3   ;;  %99 = vperm.xlu1 %650, %v57_v4   ;;  %v78_v16 = vld [vmem:[%s968_s1 + $0xb8] sm:$0xf]  ;;  %v63_v17 = vld [vmem:[%s968_s1 + $0x40] sm:$0xff]  ;;  %v77_v19 = vld [vmem:[%s968_s1 + $0xb0] sm:$0xff] }
   0x7   :  { %v66_v18 = vld [vmem:[%s968_s1 + $0x58] sm:$0xf]  ;;  %v80_v20 = vld [vmem:[%s968_s1 + $0xc8] sm:$0xf]  ;;  %v65_v21 = vld [vmem:[%s968_s1 + $0x50] sm:$0xff] }
   0x8   :  { %v68_v22 = vld [vmem:[%s968_s1 + $0x68] sm:$0xf]  ;;  %v79_v23 = vld [vmem:[%s968_s1 + $0xc0] sm:$0xff]  ;;  %v82_v24 = vld [vmem:[%s968_s1 + $0xd8] sm:$0xf] }
   0x9   :  { %v458_v25 = vld [vmem:[%s969_s2] sm:$0xff]  ;;  %v70_v27 = vld [vmem:[%s968_s1 + $0x78] sm:$0xf]  ;;  %v459_v28 = vld [vmem:[%s969_s2 + $0x8] sm:$0xff] }
   0xa   :  { %114 = vperm.xlu0 %649, %v60_v5   ;;  %174 = vperm.xlu1 %650, %v72_v6   ;;  %v67_v26 = vld [vmem:[%s968_s1 + $0x60] sm:$0xff]  ;;  %v616_v29 = vpack.c.bf16 %v459_v28, %v458_v25  ;;  %v460_v30 = vld [vmem:[%s969_s2 + $0x10] sm:$0xff]  ;;  %v84_v32 = vld [vmem:[%s968_s1 + $0xe8] sm:$0xf] }
   0xb   :  { %v81_v31 = vld [vmem:[%s968_s1 + $0xd0] sm:$0xff]  ;;  %v461_v33 = vld [vmem:[%s969_s2 + $0x18] sm:$0xff]  ;;  %v462_v35 = vld [vmem:[%s969_s2 + $0x20] sm:$0xff] }
   0xc   :  { %617 = vmatprep.subr.bf16.mxu0 %v616_v29  ;;  %v620_v34 = vpack.c.bf16 %v461_v33, %v460_v30  ;;  %v69_v36 = vld [vmem:[%s968_s1 + $0x70] sm:$0xff]  ;;  %v83_v37 = vld [vmem:[%s968_s1 + $0xe0] sm:$0xff]  ;;  %v463_v38 = vld [vmem:[%s969_s2 + $0x28] sm:$0xff] }
   0xd   :  { %619 = vmatpush3.bf16.msra.mxu0 %v616_v29  ;;  %v624_v39 = vpack.c.bf16 %v463_v38, %v462_v35  ;;  %v464_v40 = vld [vmem:[%s969_s2 + $0x30] sm:$0xff]  ;;  %v86_v41 = vld [vmem:[%s968_s1 + $0xf8] sm:$0xf]  ;;  %v466_v45 = vld [vmem:[%s969_s2 + $0x40] sm:$0xff] }
   0xe   :  { %184 = vperm.xlu0 %649, %v74_v7   ;;  %109 = vperm.xlu1 %650, %v59_v8   ;;  %v85_v42 = vld [vmem:[%s968_s1 + $0xf0] sm:$0xff]  ;;  %v465_v43 = vld [vmem:[%s969_s2 + $0x38] sm:$0xff]  ;;  %v467_v46 = vld [vmem:[%s969_s2 + $0x48] sm:$0xff] }
   0xf   :  { %621 = vmatprep.subr.bf16.mxu0 %v620_v34  ;;  %v628_v44 = vpack.c.bf16 %v465_v43, %v464_v40  ;;  %v632_v47 = vpack.c.bf16 %v467_v46, %v466_v45  ;;  %v468_v48 = vld [vmem:[%s969_s2 + $0x50] sm:$0xff]  ;;  %v469_v49 = vld [vmem:[%s969_s2 + $0x58] sm:$0xff]  ;;  %v470_v51 = vld [vmem:[%s969_s2 + $0x60] sm:$0xff] }
  0x10   :  { %v636_v50 = vpack.c.bf16 %v469_v49, %v468_v48  ;;  %v471_v52 = vld [vmem:[%s969_s2 + $0x68] sm:$0xff]  ;;  %v472_v54 = vld [vmem:[%s969_s2 + $0x70] sm:$0xff]  ;;  %v473_v55 = vld [vmem:[%s969_s2 + $0x78] sm:$0xff] }
  0x11   :  { %623 = vmatpush3.bf16.msra.mxu0 %v620_v34  ;;  %v640_v53 = vpack.c.bf16 %v471_v52, %v470_v51  ;;  %v644_v56 = vpack.c.bf16 %v473_v55, %v472_v54  ;;  %v24_v63 = vld [vmem:[%s970_s0 + $0x8] sm:$0xf]  ;;  %v26_v2 = vld [vmem:[%s970_s0 + $0x18] sm:$0xf]  ;;  %v23_v4 = vld [vmem:[%s970_s0] sm:$0xff] }
  0x12   :  { %124 = vperm.xlu0 %649, %v62_v9   ;;  %169 = vperm.xlu1 %650, %v71_v10   ;;  %v25_v6 = vld [vmem:[%s970_s0 + $0x10] sm:$0xff]  ;;  %v40_v25 = vld [vmem:[%s970_s0 + $0x88] sm:$0xf]  ;;  %v42_v34 = vld [vmem:[%s970_s0 + $0x98] sm:$0xf] }
  0x13   :  { %625 = vmatprep.subr.bf16.mxu0 %v624_v39  ;;  %v41_v40 = vld [vmem:[%s970_s0 + $0x90] sm:$0xff]  ;;  %v31_v46 = vld [vmem:[%s970_s0 + $0x40] sm:$0xff]  ;;  %v44_v52 = vld [vmem:[%s970_s0 + $0xa8] sm:$0xf] }
  0x15   :  { %627 = vmatpush3.bf16.msra.mxu0 %v624_v39 }
  0x16   :  { %179 = vperm.xlu0 %649, %v73_v11   ;;  %194 = vperm.xlu1 %650, %v76_v12  }
  0x17   :  { %629 = vmatprep.subr.bf16.mxu0 %v628_v44 }
  0x19   :  { %631 = vmatpush3.bf16.msra.mxu0 %v628_v44 }
  0x1a   :  { %119 = vperm.xlu0 %649, %v61_v13   ;;  %134 = vperm.xlu1 %650, %v64_v14  }
  0x1b   :  { %633 = vmatprep.subr.bf16.mxu0 %v632_v47 }
  0x1d   :  { %635 = vmatpush3.bf16.msra.mxu0 %v632_v47 }
  0x1e   :  { %189 = vperm.xlu0 %649, %v75_v15   ;;  %204 = vperm.xlu1 %650, %v78_v16   ;;  %v28_v15 = vld [vmem:[%s970_s0 + $0x28] sm:$0xf] }
  0x1f   :  { %637 = vmatprep.subr.bf16.mxu0 %v636_v50 }
  0x21   :  { %639 = vmatpush3.bf16.msra.mxu0 %v636_v50  ;;  %v34_v50 = vld [vmem:[%s970_s0 + $0x58] sm:$0xf] }
  0x22   :  { %129 = vperm.xlu0 %649, %v63_v17   ;;  %144 = vperm.xlu1 %650, %v66_v18   ;;  %v27_v17 = vld [vmem:[%s970_s0 + $0x20] sm:$0xff] }
  0x23   :  { %641 = vmatprep.subr.bf16.mxu0 %v640_v53 }
  0x25   :  { %643 = vmatpush3.bf16.msra.mxu0 %v640_v53 }
  0x26   :  { %199 = vperm.xlu0 %649, %v77_v19   ;;  %214 = vperm.xlu1 %650, %v80_v20  }
  0x27   :  { %645 = vmatprep.subr.bf16.mxu0 %v644_v56 }
  0x29   :  { %647 = vmatpush3.bf16.msra.mxu0 %v644_v56 }
  0x2a   :  { %139 = vperm.xlu0 %649, %v65_v21   ;;  %154 = vperm.xlu1 %650, %v68_v22  }
  0x2e   :  { %209 = vperm.xlu0 %649, %v79_v23   ;;  %224 = vperm.xlu1 %650, %v82_v24  }
  0x32   :  { %149 = vperm.xlu0 %649, %v67_v26   ;;  %164 = vperm.xlu1 %650, %v70_v27   ;;  %v39_v27 = vld [vmem:[%s970_s0 + $0x80] sm:$0xff] }
  0x36   :  { %219 = vperm.xlu0 %649, %v81_v31   ;;  %234 = vperm.xlu1 %650, %v84_v32  }
  0x3a   :  { %159 = vperm.xlu0 %649, %v69_v36   ;;  %229 = vperm.xlu1 %650, %v83_v37   ;;  %v30_v36 = vld [vmem:[%s970_s0 + $0x38] sm:$0xf] }
  0x3e   :  { %244 = vperm.xlu0 %649, %v86_v41   ;;  %239 = vperm.xlu1 %650, %v85_v42   ;;  %v29_v41 = vld [vmem:[%s970_s0 + $0x30] sm:$0xff]  ;;  %v32_v42 = vld [vmem:[%s970_s0 + $0x48] sm:$0xf] }
  0x81   :  { %v95_v57 = vpop.permute.xlu0 %94  ;;  %v90_v58 = vpop.permute.xlu1 %89 }
  0x82   :  { %v248_v3 = vadd.f32 %v95_v57, %v24_v63  ;;  %v247_v9 = vadd.f32 %v90_v58, %v23_v4  ;;  %v43_v58 = vld [vmem:[%s970_s0 + $0xa0] sm:$0xff] }
  0x84   :  { %v282_v10 = vsel %vm281_vm0, %v248_v3, -inf }
  0x85   :  { %v105_v59 = vpop.permute.xlu0 %104  ;;  %v100_v60 = vpop.permute.xlu1 %99  ;;  %v283_v16 = vmax.f32 %v247_v9, %v282_v10 }
  0x86   :  { %v250_v5 = vadd.f32 %v105_v59, %v26_v2  ;;  %v249_v11 = vadd.f32 %v100_v60, %v25_v6  ;;  %v48_v6 = vld [vmem:[%s970_s0 + $0xc8] sm:$0xf] }
  0x87   :  { %v284_v23 = vrot.slane %v283_v16, 4 }
  0x88   :  { %v290_v12 = vsel %vm281_vm0, %v250_v5, -inf  ;;  %v45_v5 = vld [vmem:[%s970_s0 + $0xb0] sm:$0xff] }
  0x89   :  { %v115_v61 = vpop.permute.xlu0 %114  ;;  %v175_v62 = vpop.permute.xlu1 %174  ;;  %v291_v18 = vmax.f32 %v249_v11, %v290_v12  ;;  %v285_v31 = vmax.f32 %v283_v16, %v284_v23 }
  0x8a   :  { %v252_v19 = vadd.f32 %v115_v61, %v28_v15  ;;  %v264_v32 = vadd.f32 %v175_v62, %v40_v25  ;;  %v46_v62 = vld [vmem:[%s970_s0 + $0xb8] sm:$0xf]  ;;  %v36_v25 = vld [vmem:[%s970_s0 + $0x68] sm:$0xf] }
  0x8b   :  { %v292_v24 = vrot.slane %v291_v18, 4  ;;  %v286_v43 = vrot.slane %v285_v31, 2 }
  0x8c   :  { %v298_v26 = vsel %vm281_vm0, %v252_v19, -inf  ;;  %v346_v44 = vsel %vm281_vm0, %v264_v32, -inf }
  0x8d   :  { %v185_v0 = vpop.permute.xlu0 %184  ;;  %v110_v1 = vpop.permute.xlu1 %109  ;;  %v293_v33 = vmax.f32 %v291_v18, %v292_v24  ;;  %v287_v60 = vmax.f32 %v285_v31, %v286_v43  ;;  %v50_v43 = vld [vmem:[%s970_s0 + $0xd8] sm:$0xf] }
  0x8e   :  { %v251_v22 = vadd.f32 %v110_v1, %v27_v17  ;;  %v266_v45 = vadd.f32 %v185_v0, %v42_v34  ;;  %v33_v0 = vld [vmem:[%s970_s0 + $0x50] sm:$0xff] }
  0x8f   :  { %v294_v47 = vrot.slane %v293_v33, 2 }
  0x90   :  { %v299_v30 = vmax.f32 %v251_v22, %v298_v26  ;;  %v354_v61 = vsel %vm281_vm0, %v266_v45, -inf }
  0x91   :  { %v125_v7 = vpop.permute.xlu0 %124  ;;  %v170_v8 = vpop.permute.xlu1 %169  ;;  %v295_v1 = vmax.f32 %v293_v33, %v294_v47 }
  0x92   :  { %v263_v35 = vadd.f32 %v170_v8, %v39_v27  ;;  %v300_v39 = vrot.slane %v299_v30, 4  ;;  %v254_v48 = vadd.f32 %v125_v7, %v30_v36 }
  0x93   :  { %v296_v22 = vrot.slane %v295_v1, 1 }
  0x94   :  { %v347_v49 = vmax.f32 %v263_v35, %v346_v44  ;;  %v301_v57 = vmax.f32 %v299_v30, %v300_v39  ;;  %v306_v2 = vsel %vm281_vm0, %v254_v48, -inf }
  0x95   :  { %v180_v13 = vpop.permute.xlu0 %179  ;;  %v195_v14 = vpop.permute.xlu1 %194 }
  0x96   :  { %v265_v51 = vadd.f32 %v180_v13, %v41_v40  ;;  %v348_v3 = vrot.slane %v347_v49, 4  ;;  %v268_v4 = vadd.f32 %v195_v14, %v44_v52  ;;  %v302_v13 = vrot.slane %v301_v57, 2  ;;  %v35_v40 = vld [vmem:[%s970_s0 + $0x60] sm:$0xff] }
  0x98   :  { %v355_v7 = vmax.f32 %v265_v51, %v354_v61  ;;  %v362_v23 = vsel %vm281_vm0, %v268_v4, -inf  ;;  %v349_v26 = vmax.f32 %v347_v49, %v348_v3  ;;  %v303_v32 = vmax.f32 %v301_v57, %v302_v13 }
  0x99   :  { %v120_v20 = vpop.permute.xlu0 %119  ;;  %v135_v21 = vpop.permute.xlu1 %134 }
  0x9a   :  { %v253_v53 = vadd.f32 %v120_v20, %v29_v41  ;;  %v256_v54 = vadd.f32 %v135_v21, %v32_v42  ;;  %v47_v20 = vld [vmem:[%s970_s0 + $0xc0] sm:$0xff]  ;;  %v288_v21 = vrot.slane %v287_v60, 1  ;;  %v356_v27 = vrot.slane %v355_v7, 4 }
  0x9b   :  { %v297_v41 = vmax.f32 %v295_v1, %v296_v22  ;;  %v350_v44 = vrot.slane %v349_v26, 2  ;;  %v304_v51 = vrot.slane %v303_v32, 1 }
  0x9c   :  { %v307_v8 = vmax.f32 %v253_v53, %v306_v2  ;;  %v314_v9 = vsel %vm281_vm0, %v256_v54, -inf  ;;  %v357_v45 = vmax.f32 %v355_v7, %v356_v27 }
  0x9d   :  { %v190_v28 = vpop.permute.xlu0 %189  ;;  %v205_v29 = vpop.permute.xlu1 %204 }
  0x9e   :  { %v267_v10 = vadd.f32 %v190_v28, %v43_v58  ;;  %v270_v15 = vadd.f32 %v205_v29, %v46_v62  ;;  %v308_v28 = vrot.slane %v307_v8, 4  ;;  %v49_v58 = vld [vmem:[%s970_s0 + $0xd0] sm:$0xff] }
  0xa0   :  { %v363_v29 = vmax.f32 %v267_v10, %v362_v23  ;;  %v370_v33 = vsel %vm281_vm0, %v270_v15, -inf  ;;  %v37_v15 = vld [vmem:[%s970_s0 + $0x70] sm:$0xff] }
  0xa1   :  { %v130_v37 = vpop.permute.xlu0 %129  ;;  %v145_v38 = vpop.permute.xlu1 %144 }
  0xa2   :  { %v255_v59 = vadd.f32 %v130_v37, %v31_v46  ;;  %v258_v63 = vadd.f32 %v145_v38, %v34_v50  ;;  %v309_v46 = vmax.f32 %v307_v8, %v308_v28  ;;  %v364_v47 = vrot.slane %v363_v29, 4 }
  0xa3   :  { %v289_v50 = vmax.f32 %v287_v60, %v288_v21  ;;  %v38_v60 = vld [vmem:[%s970_s0 + $0x78] sm:$0xf] }
  0xa4   :  { %v315_v16 = vmax.f32 %v255_v59, %v314_v9  ;;  %v322_v14 = vsel %vm281_vm0, %v258_v63, -inf  ;;  %v917_v63 = vmax.f32 %v349_v26, %v350_v44  ;;  %v310_v1 = vrot.slane %v309_v46, 2 }
  0xa5   :  { %v200_v55 = vpop.permute.xlu0 %199  ;;  %v215_v56 = vpop.permute.xlu1 %214  ;;  %v912_v59 = vsel %vm426_vm1, %v297_v41, %v289_v50  ;;  %v365_v2 = vmax.f32 %v363_v29, %v364_v47 }
  0xa6   :  { %v269_v18 = vadd.f32 %v200_v55, %v45_v5  ;;  %v272_v19 = vadd.f32 %v215_v56, %v48_v6  ;;  %v316_v34 = vrot.slane %v315_v16, 4  ;;  %v52_v5 = vld [vmem:[%s970_s0 + $0xe8] sm:$0xf]  ;;  %v922_v6 = vmax.f32 %v303_v32, %v304_v51 }
  0xa7   :  { %v311_v22 = vmax.f32 %v309_v46, %v310_v1  ;;  %v366_v23 = vrot.slane %v365_v2, 2 }
  0xa8   :  { %v371_v36 = vmax.f32 %v269_v18, %v370_v33  ;;  %v378_v37 = vsel %vm281_vm0, %v272_v19, -inf  ;;  %v317_v52 = vmax.f32 %v315_v16, %v316_v34  ;;  %v51_v19 = vld [vmem:[%s970_s0 + $0xe0] sm:$0xff]  ;;  %v54_v34 = vld [vmem:[%s970_s0 + $0xf8] sm:$0xf] }
  0xa9   :  { %v140_v11 = vpop.permute.xlu0 %139  ;;  %v155_v12 = vpop.permute.xlu1 %154  ;;  %v367_v41 = vmax.f32 %v365_v2, %v366_v23 }
  0xaa   :  { %v257_v17 = vadd.f32 %v140_v11, %v33_v0  ;;  %v260_v39 = vadd.f32 %v155_v12, %v36_v25  ;;  %v372_v54 = vrot.slane %v371_v36, 4  ;;  %v358_v0 = vrot.slane %v357_v45, 2 }
  0xab   :  { %v318_v7 = vrot.slane %v317_v52, 2  ;;  %v368_v1 = vrot.slane %v367_v41, 1 }
  0xac   :  { %v323_v24 = vmax.f32 %v257_v17, %v322_v14  ;;  %v330_v56 = vsel %vm281_vm0, %v260_v39, -inf  ;;  %v373_v10 = vmax.f32 %v371_v36, %v372_v54  ;;  %v359_v21 = vmax.f32 %v357_v45, %v358_v0 }
  0xad   :  { %v210_v30 = vpop.permute.xlu0 %209  ;;  %v225_v31 = vpop.permute.xlu1 %224  ;;  %v319_v26 = vmax.f32 %v317_v52, %v318_v7 }
  0xae   :  { %v271_v35 = vadd.f32 %v210_v30, %v47_v20  ;;  %v324_v38 = vrot.slane %v323_v24, 4  ;;  %v274_v57 = vadd.f32 %v225_v31, %v50_v43  ;;  %v352_v20 = vrot.slane %v917_v63, 1 }
  0xaf   :  { %v374_v30 = vrot.slane %v373_v10, 2  ;;  %v360_v50 = vrot.slane %v359_v21, 1  ;;  %v320_v51 = vrot.slane %v319_v26, 1 }
  0xb0   :  { %v379_v42 = vmax.f32 %v271_v35, %v378_v37  ;;  %v325_v55 = vmax.f32 %v323_v24, %v324_v38  ;;  %v386_v12 = vsel %vm281_vm0, %v274_v57, -inf  ;;  %v53_v35 = vld [vmem:[%s970_s0 + $0xf0] sm:$0xff] }
  0xb1   :  { %v150_v48 = vpop.permute.xlu0 %149  ;;  %v165_v49 = vpop.permute.xlu1 %164  ;;  %v375_v52 = vmax.f32 %v373_v10, %v374_v30 }
  0xb2   :  { %v259_v53 = vadd.f32 %v150_v48, %v35_v40  ;;  %v380_v61 = vrot.slane %v379_v42, 4  ;;  %v326_v11 = vrot.slane %v325_v55, 2  ;;  %v262_v13 = vadd.f32 %v165_v49, %v38_v60 }
  0xb3   :  { %v312_v40 = vrot.slane %v311_v22, 1 }
  0xb4   :  { %v331_v62 = vmax.f32 %v259_v53, %v330_v56  ;;  %v381_v16 = vmax.f32 %v379_v42, %v380_v61  ;;  %v327_v31 = vmax.f32 %v325_v55, %v326_v11  ;;  %v338_v32 = vsel %vm281_vm0, %v262_v13, -inf }
  0xb5   :  { %v220_v3 = vpop.permute.xlu0 %219  ;;  %v235_v4 = vpop.permute.xlu1 %234  ;;  %v313_v0 = vmax.f32 %v311_v22, %v312_v40 }
  0xb6   :  { %v332_v8 = vrot.slane %v331_v62, 4  ;;  %v273_v9 = vadd.f32 %v220_v3, %v49_v58  ;;  %v276_v18 = vadd.f32 %v235_v4, %v52_v5  ;;  %v382_v36 = vrot.slane %v381_v16, 2 }
  0xb7   :  { %v328_v54 = vrot.slane %v327_v31, 1  ;;  %v429_v3 = vsel %vm428_vm2, %v922_v6, %v912_v59  ;;  %v321_v4 = vmax.f32 %v319_v26, %v320_v51  ;;  %v376_v5 = vrot.slane %v375_v52, 1 }
  0xb8   :  { %v333_v17 = vmax.f32 %v331_v62, %v332_v8  ;;  %v387_v14 = vmax.f32 %v273_v9, %v386_v12  ;;  %v394_v38 = vsel %vm281_vm0, %v276_v18, -inf  ;;  %v383_v55 = vmax.f32 %v381_v16, %v382_v36 }
  0xb9   :  { %v160_v24 = vpop.permute.xlu0 %159  ;;  %v230_v25 = vpop.permute.xlu1 %229  ;;  %v361_v9 = vmax.f32 %v359_v21, %v360_v50  ;;  %v329_v10 = vmax.f32 %v327_v31, %v328_v54  ;;  %v369_v18 = vmax.f32 %v367_v41, %v368_v1  ;;  %v431_v59 = vsel %vm430_vm3, %v313_v0, %v429_v3 }
  0xba   :  { %v334_v27 = vrot.slane %v333_v17, 2  ;;  %v388_v28 = vrot.slane %v387_v14, 4  ;;  %v261_v29 = vadd.f32 %v160_v24, %v37_v15  ;;  %v275_v33 = vadd.f32 %v230_v25, %v51_v19 }
  0xbb   :  { %v384_v11 = vrot.slane %v383_v55, 1  ;;  %v377_v6 = vmax.f32 %v375_v52, %v376_v5  ;;  %v433_v21 = vsel %vm432_vm4, %v321_v4, %v431_v59 }
  0xbc   :  { %v389_v37 = vmax.f32 %v387_v14, %v388_v28  ;;  %v339_v39 = vmax.f32 %v261_v29, %v338_v32  ;;  %v335_v42 = vmax.f32 %v333_v17, %v334_v27  ;;  %v395_v43 = vmax.f32 %v275_v33, %v394_v38 }
  0xbd   :  { %v245_v44 = vpop.permute.xlu0 %244  ;;  %v240_v45 = vpop.permute.xlu1 %239  ;;  %v353_v14 = vmax.f32 %v917_v63, %v352_v20  ;;  %v385_v24 = vmax.f32 %v383_v55, %v384_v11  ;;  %v435_v26 = vsel %vm434_vm5, %v329_v10, %v433_v21 }
  0xbe   :  { %v390_v46 = vrot.slane %v389_v37, 2  ;;  %v340_v47 = vrot.slane %v339_v39, 4  ;;  %v278_v48 = vadd.f32 %v245_v44, %v54_v34  ;;  %v277_v49 = vadd.f32 %v240_v45, %v53_v35 }
  0xbf   :  { %v396_v53 = vrot.slane %v395_v43, 4  ;;  %v336_v60 = vrot.slane %v335_v42, 1  ;;  %v440_v27 = vsel %vm426_vm1, %v361_v9, %v353_v14 }
  0xc0   :  { %v341_v56 = vmax.f32 %v339_v39, %v340_v47  ;;  %v402_v57 = vsel %vm281_vm0, %v278_v48, -inf  ;;  %v391_v58 = vmax.f32 %v389_v37, %v390_v46  ;;  %v441_v31 = vsel %vm428_vm2, %v369_v18, %v440_v27  ;;  %v562_v39 = vld [vmem:[%s971_s3] ss:$0 sm:$0xff] }
  0xc1   :  { %v397_v61 = vmax.f32 %v395_v43, %v396_v53  ;;  %v403_v62 = vmax.f32 %v277_v49, %v402_v57  ;;  %v337_v17 = vmax.f32 %v335_v42, %v336_v60  ;;  %v442_v33 = vsel %vm430_vm3, %v377_v6, %v441_v31 }
  0xc2   :  { %v342_v2 = vrot.slane %v341_v56, 2  ;;  %v392_v13 = vrot.slane %v391_v58, 1  ;;  %v443_v34 = vsel %vm432_vm4, %v385_v24, %v442_v33 }
  0xc3   :  { %v398_v7 = vrot.slane %v397_v61, 2  ;;  %v404_v8 = vrot.slane %v403_v62, 4  ;;  %v437_v30 = vsel %vm436_vm6, %v337_v17, %v435_v26 }
  0xc4   :  { %v343_v12 = vmax.f32 %v341_v56, %v342_v2  ;;  %v393_v28 = vmax.f32 %v391_v58, %v392_v13 }
  0xc5   :  { %v399_v15 = vmax.f32 %v397_v61, %v398_v7  ;;  %v405_v16 = vmax.f32 %v403_v62, %v404_v8 }
  0xc6   :  { %v344_v19 = vrot.slane %v343_v12, 1  ;;  %v444_v36 = vsel %vm434_vm5, %v393_v28, %v443_v34 }
  0xc7   :  { %v400_v22 = vrot.slane %v399_v15, 1  ;;  %v406_v23 = vrot.slane %v405_v16, 2 }
  0xc8   :  { %v345_v25 = vmax.f32 %v343_v12, %v344_v19 }
  0xc9   :  { %v407_v29 = vmax.f32 %v405_v16, %v406_v23  ;;  %v401_v20 = vmax.f32 %v399_v15, %v400_v22 }
  0xca   :  { %v439_v63 = vsel %vm438_vm7, %v345_v25, %v437_v30 }
  0xcb   :  { %613 = vmatprep.mubr.f32.mxu0 %v439_v63  ;;  %v408_v32 = vrot.slane %v407_v29, 1  ;;  %v445_v37 = vsel %vm436_vm6, %v401_v20, %v444_v36 }
  0xcd   :  { %v409_v35 = vmax.f32 %v407_v29, %v408_v32 }
  0xcf   :  { %v446_v38 = vsel %vm438_vm7, %v409_v35, %v445_v37 }
  0xd0   :  { %614 = vmatmul.mubr.f32.vlgmr.msra.gmra.mrb[0].mxu0 %v446_v38 }
 0x1a3   :  { %v615_v40 = vpop.f32.mrb[0].mxu0 }
 0x1a4   :  { %v553_v41 = vadd.f32 %v615_v40, %v562_v39  ;;  %v547_v42 = vpop.f32.mrb[1].mxu0 }
 0x1a5   :  { %v548_v43 = vadd.f32 %v562_v39, %v547_v42 }
 0x1a6   :  { %557 = vst [vmem:[%s972_s4 + $0x8] sm:$0xff] %v553_v41 }
 0x1a7   :  { %556 = vst [vmem:[%s972_s4] sm:$0xff] %v548_v43 }

</bundles_post_ra>
